<compile_context>
chip_gen: v7x
topology: tpu7x:2x2x1
jax: 0.10.0
libtpu: 0.0.40
codegen_flags: <defaults>
</compile_context>

<pallas_src>
import jax
import jax.numpy as jnp
from jax.experimental import pallas as pl
from jax.experimental.pallas import tpu as pltpu


def _round_up(x: int, m: int) -> int:
    return ((x + m - 1) // m) * m


def _classifier_head_kernel(x_ref, w_ref, b_ref, o_ref, acc_ref):
    """One (tm, tn) output tile; accumulate over the k (hidden) grid axis."""
    k = pl.program_id(2)

    @pl.when(k == 0)
    def _():
        acc_ref[...] = jnp.zeros_like(acc_ref)

    # bf16 x bf16 -> f32 accumulate on the MXU.
    acc_ref[...] += jnp.dot(
        x_ref[...], w_ref[...], preferred_element_type=jnp.float32
    )

    @pl.when(k == pl.num_programs(2) - 1)
    def _():
        # Bias applied exactly once, at finalize (not per K step).
        o_ref[...] = (acc_ref[...] + b_ref[...]).astype(o_ref.dtype)


def classifier_head(x, w, b, *, tm=None, tn=None, tk=None):
    """logits = x @ w + b via a tiled Pallas TPU kernel.

    x: [B, H] float  (batch, hidden)
    w: [H, C] float  (hidden, classes)
    b: [C]    float
    returns: [B, C] float32
    """
    B, H = x.shape
    H2, C = w.shape
    assert H == H2, (H, H2)
    assert b.shape == (C,), b.shape

    # Tile sizes: sublane-aligned (>=8/16) batch tiles, 128-aligned lane tiles.
    # Caps keep the live VMEM footprint (2x double-buffered inputs + output +
    # f32 accumulator) under ~4 MiB, safe for v7x's smaller VMEM while still
    # big enough to amortize per-step grid overhead on v5e/v6e.
    tm = tm if tm is not None else min(256, _round_up(B, 16))
    tn = tn if tn is not None else min(512, _round_up(C, 128))
    tk = tk if tk is not None else min(512, _round_up(H, 128))

    Bp = _round_up(B, tm)
    Cp = _round_up(C, tn)
    Hp = _round_up(H, tk)

    # bf16 operands for MXU peak; zero-padding along K/B/C is numerically
    # inert (zero partial products, padded rows/cols sliced off below).
    xp = jnp.pad(x.astype(jnp.bfloat16), ((0, Bp - B), (0, Hp - H)))
    wp = jnp.pad(w.astype(jnp.bfloat16), ((0, Hp - H), (0, Cp - C)))
    bp = jnp.pad(b.astype(jnp.float32), (0, Cp - C)).reshape(1, Cp)

    grid = (Bp // tm, Cp // tn, Hp // tk)

    out_padded = pl.pallas_call(
        _classifier_head_kernel,
        out_shape=jax.ShapeDtypeStruct((Bp, Cp), jnp.float32),
        grid_spec=pltpu.PrefetchScalarGridSpec(
            num_scalar_prefetch=0,
            grid=grid,
            in_specs=[
                pl.BlockSpec((tm, tk), lambda i, j, k: (i, k)),   # x
                pl.BlockSpec((tk, tn), lambda i, j, k: (k, j)),   # w
                pl.BlockSpec((1, tn), lambda i, j, k: (0, j)),    # bias
            ],
            out_specs=pl.BlockSpec((tm, tn), lambda i, j, k: (i, j)),
            scratch_shapes=[pltpu.VMEM((tm, tn), jnp.float32)],
        ),
        compiler_params=pltpu.CompilerParams(
            # batch / class axes independent -> shard across v7x's 2 TCs;
            # hidden axis is the reduction -> "arbitrary".
            dimension_semantics=("parallel", "parallel", "arbitrary"),
            vmem_limit_bytes=32 * 1024 * 1024,
        ),
    )(xp, wp, bp)

    return out_padded[:B, :C]


if __name__ == "__main__":
    # Deterministic synthetic parameters / inputs (no checkpoint loading).
    # Small shapes, chosen so padding (B->16, C->128) and the K-accumulation
    # loop (H=256, tk=128 -> 2 steps) are both exercised.
    key = jax.random.PRNGKey(0)
    kx, kw, kb = jax.random.split(key, 3)

    batch = 12
    hidden = 256
    num_classes = 10

    x = jax.random.normal(kx, (batch, hidden), dtype=jnp.float32)
    w = jax.random.normal(kw, (hidden, num_classes), dtype=jnp.float32) * 0.05
    b = jax.random.normal(kb, (num_classes,), dtype=jnp.float32) * 0.01

    logits = classifier_head(x, w, b, tk=128)
    logits = jax.block_until_ready(logits)

    # Correctness check against a JAX reference with the same bf16 operand
    # quantization (f32 accumulation), plus a looser full-f32 sanity check.
    x_q = x.astype(jnp.bfloat16).astype(jnp.float32)
    w_q = w.astype(jnp.bfloat16).astype(jnp.float32)
    ref_q = x_q @ w_q + b[None, :]
    ref_f32 = x @ w + b[None, :]

    assert logits.shape == (batch, num_classes)
    assert jnp.allclose(logits, ref_q, atol=1e-3, rtol=1e-3), "mismatch vs bf16 reference"
    assert jnp.allclose(logits, ref_f32, atol=0.1, rtol=0.1), "mismatch vs f32 reference"

    print("KERNEL_OK")
</pallas_src>

<mosaic_0001>
module attributes {stable_mosaic.version = 11 : i64} {
  func.func @_classifier_head_kernel(%arg0: i32, %arg1: i32, %arg2: i32, %arg3: memref<16x128xbf16, #tpu.memory_space<vmem>>, %arg4: memref<128x128xbf16, #tpu.memory_space<vmem>>, %arg5: memref<1x128xf32, #tpu.memory_space<vmem>>, %arg6: memref<16x128xf32, #tpu.memory_space<vmem>>, %arg7: memref<16x128xf32, #tpu.memory_space<vmem>>) attributes {dimension_semantics = [#tpu.dimension_semantics<parallel>, #tpu.dimension_semantics<parallel>, #tpu.dimension_semantics<arbitrary>], iteration_bounds = array<i64: 1, 1, 2>, scalar_prefetch = 0 : i64, scratch_operands = 1 : i64, tpu.core_type = #tpu.core_type<tc>, window_params = [{transform_indices = @transform_0, window_bounds = array<i64: 16, 128>}, {transform_indices = @transform_1, window_bounds = array<i64: 128, 128>}, {transform_indices = @transform_2, window_bounds = array<i64: 1, 128>}, {transform_indices = @transform_3, window_bounds = array<i64: 16, 128>}]} {
    %c0_i32 = arith.constant 0 : i32
    %0 = arith.cmpi eq, %arg2, %c0_i32 : i32
    %1 = arith.extui %0 : i1 to i32
    %c0_i32_0 = arith.constant 0 : i32
    %2 = arith.cmpi ne, %1, %c0_i32_0 : i32
    scf.if %2 {
      %cst_9 = arith.constant 0.000000e+00 : f32
      %12 = vector.broadcast %cst_9 : f32 to vector<16x128xf32>
      %c0_10 = arith.constant 0 : index
      %c0_11 = arith.constant 0 : index
      %13 = vector.load %arg7[%c0_10, %c0_11] : memref<16x128xf32, #tpu.memory_space<vmem>>, vector<16x128xf32>
      tpu.vector_store %arg7[%c0_10, %c0_11], %12 {strides = array<i32>} : memref<16x128xf32, #tpu.memory_space<vmem>>, vector<16x128xf32>,
    } else {
    }
    %c0 = arith.constant 0 : index
    %c0_1 = arith.constant 0 : index
    %3 = vector.load %arg7[%c0, %c0_1] : memref<16x128xf32, #tpu.memory_space<vmem>>, vector<16x128xf32>
    %c0_2 = arith.constant 0 : index
    %c0_3 = arith.constant 0 : index
    %4 = vector.load %arg3[%c0_2, %c0_3] : memref<16x128xbf16, #tpu.memory_space<vmem>>, vector<16x128xbf16>
    %c0_4 = arith.constant 0 : index
    %c0_5 = arith.constant 0 : index
    %5 = vector.load %arg4[%c0_4, %c0_5] : memref<128x128xbf16, #tpu.memory_space<vmem>>, vector<128x128xbf16>
    %cst = arith.constant dense<0.000000e+00> : vector<16x128xf32>
    %6 = tpu.matmul %4, %5, %cst {dimension_numbers = #tpu.dot_dimension_numbers<[1], [0], [0], [1], [0, 0, 1, 1], [], []>} : vector<16x128xbf16>, vector<128x128xbf16>, vector<16x128xf32> -> vector<16x128xf32>
    %7 = arith.addf %3, %6 : vector<16x128xf32>
    %c0_6 = arith.constant 0 : index
    %c0_7 = arith.constant 0 : index
    %8 = vector.load %arg7[%c0_6, %c0_7] : memref<16x128xf32, #tpu.memory_space<vmem>>, vector<16x128xf32>
    tpu.vector_store %arg7[%c0_6, %c0_7], %7 {strides = array<i32>} : memref<16x128xf32, #tpu.memory_space<vmem>>, vector<16x128xf32>,
    %c1_i32 = arith.constant 1 : i32
    %9 = arith.cmpi eq, %arg2, %c1_i32 : i32
    %10 = arith.extui %9 : i1 to i32
    %c0_i32_8 = arith.constant 0 : i32
    %11 = arith.cmpi ne, %10, %c0_i32_8 : i32
    scf.if %11 {
      %c0_9 = arith.constant 0 : index
      %c0_10 = arith.constant 0 : index
      %12 = vector.load %arg7[%c0_9, %c0_10] : memref<16x128xf32, #tpu.memory_space<vmem>>, vector<16x128xf32>
      %c0_11 = arith.constant 0 : index
      %c0_12 = arith.constant 0 : index
      %13 = vector.load %arg5[%c0_11, %c0_12] : memref<1x128xf32, #tpu.memory_space<vmem>>, vector<1x128xf32>
      %14 = vector.broadcast %13 : vector<1x128xf32> to vector<16x128xf32>
      %15 = arith.addf %12, %14 : vector<16x128xf32>
      %c0_13 = arith.constant 0 : index
      %c0_14 = arith.constant 0 : index
      %16 = vector.load %arg6[%c0_13, %c0_14] : memref<16x128xf32, #tpu.memory_space<vmem>>, vector<16x128xf32>
      tpu.vector_store %arg6[%c0_13, %c0_14], %15 {strides = array<i32>} : memref<16x128xf32, #tpu.memory_space<vmem>>, vector<16x128xf32>,
    } else {
    }
    return
  }
  func.func @transform_0(%arg0: i32, %arg1: i32, %arg2: i32) -> (i32, i32) {
    %c0_i32 = arith.constant 0 : i32
    return %arg0, %arg2 : i32, i32
  }
  func.func @transform_1(%arg0: i32, %arg1: i32, %arg2: i32) -> (i32, i32) {
    %c0_i32 = arith.constant 0 : i32
    return %arg2, %arg1 : i32, i32
  }
  func.func @transform_2(%arg0: i32, %arg1: i32, %arg2: i32) -> (i32, i32) {
    %c0_i32 = arith.constant 0 : i32
    %c0_i32_0 = arith.constant 0 : i32
    return %c0_i32, %arg1 : i32, i32
  }
  func.func @transform_3(%arg0: i32, %arg1: i32, %arg2: i32) -> (i32, i32) {
    %c0_i32 = arith.constant 0 : i32
    return %arg0, %arg1 : i32, i32
  }
}

</mosaic_0001>

<bundles_post_ra>
// kernel: tpu_custom_call.1
= control target key start
LH: loop header
LB: loop body
LE: loop exit
PB: predicated region body
PF: predicated region fallthrough
CT: control target
= control target key end

     0   :  { %8 = vsyncpa [#allocation4], 0  ;;  %s1069_s0 = inlined_call_operand.hbm [shape: bf16[16,256], index: 0, kind: input, shape index: {}]   ;;  %s1070_s1 = inlined_call_operand.hbm [shape: bf16[256,128], index: 1, kind: input, shape index: {}]   ;;  %s1071_s2 = inlined_call_operand.vmem [shape: f32[1,128], index: 2, kind: input, shape index: {}]   ;;  %s1072_s3 = inlined_call_operand.hbm [shape: f32[16,128], index: 3, kind: output, shape index: {}]  }
   0x1   :  { %10 = vsyncpa [#allocation4 + $0x1], 0 }
   0x2   :  { %11 = vsyncpa [#allocation7], 0 }
   0x3   :  { %13 = vsyncpa [#allocation7 + $0x1], 0 }
   0x4   :  { %14 = vsyncpa [#allocation5], 0  ;;  %s847_s12 = smov 0   ;;  %s849_s13 = smov 0  }
   0x5   :  { %s851_s14 = smov 0   ;;  %s853_s15 = smov 0  }
   0x6   :  { %s855_s16 = smov 0   ;;  %s857_s17 = smov 0  }
   0x7 LB: > { %s528_s18 = sadd.s32 4294967295, %s814_s17   ;;  %s32_s19 = sadd.s32 1, %s810_s16  ;;  %s814_s17 = sphi %s857_s17, %s20_s17   ;;  %s810_s16 = sphi %s855_s16, %s1085_s16   ;;  %s806_s15 = sphi %s853_s15, %s1084_s15   ;;  %s802_s14 = sphi %s851_s14, %s1083_s14   ;;  %s798_s13 = sphi %s849_s13, %s1082_s13   ;;  %s794_s12 = sphi %s847_s12, %s1081_s12  }
   0x8   : > { %p33_p0 = scmp.ge.s32.totalorder %s32_s19, 2  ;;  %s48_s20 = sadd.s32 1, %s802_s14 }
   0x9   : > { %p55_p1 = scmp.ne.s32.totalorder %s802_s14, %s798_s13  ;;  %p56_p2 = scmp.eq.s32.totalorder %s814_s17, 0 }
   0xa   : > { %s1087_s19 = smov (%p33_p0, %s32_s19), 0  ;;  %p61_p4 = scmp.ne.s32.totalorder %s798_s13, %s794_s12 }
   0xb   : > { %p883_p3 = por %p56_p2, %p55_p1  ;;  %s44_s22 = ssub.s32 %s810_s16, %s1087_s19 }
   0xc   : > { %p62_p5 = scmp.eq.s32.totalorder %s528_s18, 0  ;;  %p46_p6 = scmp.eq.s32.totalorder %s44_s22, 0 }
   0xd   : > { %p601_p8 = scmp.lt.s32.totalorder %s814_s17, 2  ;;  %s901_s25 = sand.u32 1, %s802_s14  }
   0xe   : > { %p892_p7 = por %p62_p5, %p61_p4  ;;  %s533_s26 = sshll.u32 %s810_s16, 6 }
   0xf   : > { %s898_s24 = scalar_select %p46_p6, %s802_s14, %s48_s20  }
  0x10   : > { %s1075_s23 = scalar_select %p892_p7, 1, 0 }
  0x11   : > { %s532_s27 = sshll.u32 %s901_s25, 3  ;;  %s908_s30 = scalar_lea.hbm %s1069_s0, %s533_s26 }
  0x12   : > { %s177_s4 = scalar_lea.vmem [#allocation3], %s532_s27  ;;  %p912_p9 = pnand %p601_p8, %p883_p3 }
  0x13   : > { %s186_s5 = sshll.u32 %s177_s4, 4  ;;  %s174_s7 = scalar_lea.sflag [#allocation4], %s901_s25  ;;  %s916_s5 = int_to_ptr.vmem [resolvable:$true] %s186_s5 }
  0x14   : > { %s670_s8 = scalar_lea.hbm %s908_s30, 128  ;;  %p672_p12 = pneg %p912_p9 }
  0x15   : > { %p671_p11 = scmp.ne.s32.totalorder %s908_s30, %s670_s8  ;;  %s675_s11 = scalar_lea.hbm %s1069_s0, 256 }
  0x16   : > { %p676_p1 = scmp.lt.u32.totalorder %s908_s30, %s1069_s0  ;;  %p677_p2 = scmp.lt.u32.totalorder %s675_s11, %s670_s8 }
  0x17   : > { %p673_p13 = pnand %p672_p12, %p671_p11  ;;  %p679_p4 = scmp.lt.u32.totalorder %s670_s8, %s908_s30 }
  0x18   : > { %p678_p3 = por %p677_p2, %p676_p1 }
  0x19   : > { %p674_p0 = pneg %p673_p13 }
  0x1a   : > { %p680_p5 = por %p679_p4, %p678_p3 }
  0x1c   : > { %p681_p6 = pnand %p680_p5, %p674_p0 }
  0x1e   : > { %684 = shalt.err (!%p681_p6)
}
  0x1f   : > { %s685_s21 = scalar_lea.vmem %s916_s5, 128  ;;  %s816_s22 = smov [#allocation3]  }
  0x20   : > { %p686_p8 = scmp.ne.s32.totalorder %s916_s5, %s685_s21  ;;  %s690_s26 = sshll.u32 %s816_s22, 4  ;;  %s691_s26 = int_to_ptr.vmem [resolvable:$false] %s690_s26 }
  0x21   : > { %s692_s27 = scalar_lea.vmem %s691_s26, 256  ;;  %p693_p10 = scmp.lt.s32.totalorder %s916_s5, %s691_s26 }
  0x22   : > { %p688_p11 = pnand %p686_p8, %p672_p12  ;;  %p694_p1 = scmp.lt.s32.totalorder %s692_s27, %s685_s21 }
  0x24   : > { %p689_p13 = pneg %p688_p11  ;;  %p695_p2 = por %p694_p1, %p693_p10 }
  0x26   : > { %p696_p3 = pnand %p695_p2, %p689_p13 }
  0x28   : > { %699 = shalt.err (!%p696_p3)
}
  0x29   : > { %s817_s28 = smov 128   ;;  %s818_s29 = smov 64  }
  0x2a   : > { %s819_s4 = smov 4   ;;  %p216_p10 = scmp.lt.s32.totalorder %s814_s17, 3 }
  0x2b   : > { %597 = dma.hbm_to_vmem [thread:$0]  (!%p912_p9), %s908_s30, 128, %s916_s5, %s174_s7, %s817_s28, %s818_s29, %s819_s4  }
  0x2c   : > { %s534_s8 = sshll.u32 %s901_s25, 6  ;;  %s556_s9 = sshll.u32 %s810_s16, 10 }
  0x2d   : > { %p1077_p0 = scmp.ge.s32.totalorder %s814_s17, 1  ;;  %s961_s20 = scalar_lea.hbm %s1070_s1, %s556_s9 }
  0x2e   : > { %s200_s21 = scalar_lea.vmem [#allocation6], %s534_s8  ;;  %s197_s30 = scalar_lea.sflag [#allocation7], %s901_s25 }
  0x2f   : > { %p954_p4 = pnand %p1077_p0, %p216_p10  ;;  %s208_s22 = sshll.u32 %s200_s21, 4  ;;  %s963_s22 = int_to_ptr.vmem [resolvable:$true] %s208_s22 }
  0x30   : > { %s700_s5 = scalar_lea.hbm %s961_s20, 1024  ;;  %s705_s27 = scalar_lea.hbm %s1070_s1, 2048 }
  0x31   : > { %p701_p5 = scmp.ne.s32.totalorder %s961_s20, %s700_s5  ;;  %p706_p11 = scmp.lt.u32.totalorder %s961_s20, %s1070_s1 }
  0x32   : > { %p707_p13 = scmp.lt.u32.totalorder %s705_s27, %s700_s5  ;;  %p709_p2 = scmp.lt.u32.totalorder %s700_s5, %s961_s20 }
  0x33   : > { %p703_p6 = pnand %p701_p5, %p672_p12 }
  0x34   : > { %p708_p1 = por %p707_p13, %p706_p11 }
  0x35   : > { %p704_p8 = pneg %p703_p6 }
  0x36   : > { %p710_p3 = por %p709_p2, %p708_p1 }
  0x38   : > { %p711_p10 = pnand %p710_p3, %p704_p8 }
  0x3a   : > { %714 = shalt.err (!%p711_p10)
}
  0x3b   : > { %s715_s8 = scalar_lea.vmem %s963_s22, 1024  ;;  %s820_s11 = smov [#allocation6]  }
  0x3c   : > { %p716_p0 = scmp.ne.s32.totalorder %s963_s22, %s715_s8  ;;  %s720_s12 = sshll.u32 %s820_s11, 4  ;;  %s721_s12 = int_to_ptr.vmem [resolvable:$false] %s720_s12 }
  0x3d   : > { %s722_s21 = scalar_lea.vmem %s721_s12, 2048  ;;  %p723_p7 = scmp.lt.s32.totalorder %s963_s22, %s721_s12 }
  0x3e   : > { %p718_p5 = pnand %p716_p0, %p672_p12  ;;  %p724_p11 = scmp.lt.s32.totalorder %s722_s21, %s715_s8 }
  0x40   : > { %p719_p6 = pneg %p718_p5  ;;  %p725_p13 = por %p724_p11, %p723_p7 }
  0x42   : > { %p726_p1 = pnand %p725_p13, %p719_p6 }
  0x44   : > { %729 = shalt.err (!%p726_p1)
}
  0x45   : > { %600 = dma.hbm_to_vmem [thread:$0]  (!%p912_p9), %s961_s20, 1024, %s963_s22, %s197_s30, %s818_s29, %s818_s29, %s819_s4  }
  0x46   : > { %220 = sbr.rel (%p954_p4) target bundleno = 376 (0x178), region = 32  ;;  %s222_s5 = sand.u32 (!%p954_p4), 1, %s798_s13  }
  0x47   : > { %s538_s7 = sshll.u32 (!%p954_p4), %s222_s5, 3  ;;  %s223_s26 = scalar_lea.sflag (!%p954_p4), [#allocation4], %s222_s5 }
  0x48   : > { %s997_s27 = scalar_lea.vmem (!%p954_p4), [#allocation3], %s538_s7  ;;  %p1079_p7 = scmp.ne.s32.totalorder (!%p954_p4), %s1075_s23, 0 }
  0x4d   : > { %781 = dma.done.wait (%p1079_p7), %s223_s26, 128  }
  0x4e   : > { %783 = vsyncadd (%p1079_p7), %s223_s26, 4294967168  ;;  %s539_s25 = sshll.u32 %s222_s5, 6  ;;  %s232_s6 = scalar_lea.sflag [#allocation7], %s222_s5 }
  0x4f   : > { %s1003_s28 = scalar_lea.vmem [#allocation6], %s539_s25 }
  0x50   : > { %785 = dma.done.wait (%p1079_p7), %s232_s6, 1024  }
  0x51   : > { %787 = vsyncadd (%p1079_p7), %s232_s6, 4294966272  ;;  %p540_p9 = scmp.ne.s32.totalorder %s806_s15, 0 }
  0x52   : > { %v821_v0 = vmov (!%p540_p9), 0.0  }
  0x53   : > { %271 = sbr.rel (%p540_p9) target bundleno = 90 (0x5a), region = 44  ;;  %272 = vst [vmem:[#allocation2] sm:$0xff] (!%p540_p9), %v821_v0  ;;  %273 = vst [vmem:[#allocation2 + $0x8] sm:$0xff] (!%p540_p9), %v821_v0 }
  0x5a PF: > { %v661_v1 = vld [vmem:[%s1003_s28] sm:$0xff]   ;;  %v822_v2 = vmov 0.0   ;;  %v662_v3 = vld [vmem:[%s1003_s28 + $0x8] sm:$0xff]   ;;  %vm823_vm0 = vmmov 0   ;;  %v663_v4 = vld [vmem:[%s1003_s28 + $0x10] sm:$0xff]   ;;  %p550_p12 = scmp.ne.s32.totalorder %s806_s15, 1 }
  0x5b   : > { %566 = vmatprep.subr.bf16.mxu0 %v822_v2  ;;  %582 = vmatprep.mubr.msk.bf16.mxu0 %vm823_vm0, %v822_v2  ;;  %v664_v5 = vld [vmem:[%s1003_s28 + $0x18] sm:$0xff]   ;;  %v665_v6 = vld [vmem:[%s1003_s28 + $0x20] sm:$0xff]   ;;  %v666_v7 = vld [vmem:[%s1003_s28 + $0x28] sm:$0xff]  }
  0x5c   : > { %567 = vmatpush3.bf16.msra.mxu0 %v661_v1  ;;  %v667_v8 = vld [vmem:[%s1003_s28 + $0x30] sm:$0xff]   ;;  %v668_v9 = vld [vmem:[%s1003_s28 + $0x38] sm:$0xff]   ;;  %v274_v11 = vld [vmem:[#allocation2] sm:$0xff] }
  0x5d   : > { %568 = vmatprep.subr.bf16.mxu0 %v822_v2  ;;  %v669_v10 = vld [vmem:[%s997_s27] sm:$0xff]   ;;  %v275_v13 = vld [vmem:[#allocation2 + $0x8] sm:$0xff]  ;;  %v551_v20 = vld [vmem:[%s1071_s2] ss:$0 sm:$0xff] (!%p550_p12) }
  0x60   : > { %569 = vmatpush3.bf16.msra.mxu0 %v662_v3 }
  0x61   : > { %570 = vmatprep.subr.bf16.mxu0 %v822_v2 }
  0x64   : > { %571 = vmatpush3.bf16.msra.mxu0 %v663_v4 }
  0x65   : > { %572 = vmatprep.subr.bf16.mxu0 %v822_v2 }
  0x68   : > { %573 = vmatpush3.bf16.msra.mxu0 %v664_v5 }
  0x69   : > { %574 = vmatprep.subr.bf16.mxu0 %v822_v2 }
  0x6c   : > { %575 = vmatpush3.bf16.msra.mxu0 %v665_v6 }
  0x6d   : > { %576 = vmatprep.subr.bf16.mxu0 %v822_v2 }
  0x70   : > { %577 = vmatpush3.bf16.msra.mxu0 %v666_v7 }
  0x71   : > { %578 = vmatprep.subr.bf16.mxu0 %v822_v2 }
  0x74   : > { %579 = vmatpush3.bf16.msra.mxu0 %v667_v8 }
  0x75   : > { %580 = vmatprep.subr.bf16.mxu0 %v822_v2 }
  0x78   : > { %581 = vmatpush3.bf16.msra.mxu0 %v668_v9 }
  0x7b   : > { %583 = vmatmul.mubr.bf16.vlgmr.msra.gmra.mrb[0].mxu0 %v669_v10 }
 0x14d   : > { %396 = sbr.rel (%p550_p12) target bundleno = 350 (0x15e), region = 48 }
 0x14e   : > { %v382_v12 = vpop.f32.mrb[0].mxu0 }
 0x14f   : > { %v389_v14 = vadd.f32 %v382_v12, %v274_v11  ;;  %v584_v15 = vpop.f32.mrb[1].mxu0 }
 0x150   : > { %v385_v16 = vpop.f32.mrb[2].mxu0 }
 0x151   : > { %391 = vst [vmem:[#allocation2] sm:$0xff] %v389_v14  ;;  %v390_v17 = vadd.f32 %v385_v16, %v275_v13  ;;  %v585_v18 = vpop.f32.mrb[3].mxu0 }
 0x153   : > { %392 = vst [vmem:[#allocation2 + $0x8] sm:$0xff] %v390_v17 }
 0x158   : > { %v397_v19 = vld [vmem:[#allocation2] sm:$0xff] }
 0x159   : > { %v406_v22 = vadd.f32 %v551_v20, %v397_v19 }
 0x15a   : > { %v398_v21 = vld [vmem:[#allocation2 + $0x8] sm:$0xff] }
 0x15b   : > { %v407_v23 = vadd.f32 %v551_v20, %v398_v21  ;;  %408 = vst [vmem:[#allocation8] sm:$0xff] %v406_v22 }
 0x15d   : > { %409 = vst [vmem:[#allocation8 + $0x8] sm:$0xff] %v407_v23 }
 0x15e PF: > { %p1025_p4 = scmp.eq.s32.totalorder %s528_s18, 1  ;;  %s824_s15 = smov [#allocation8]  }
 0x15f   : > { %s420_s10 = sshll.u32 %s824_s15, 4  ;;  %s421_s10 = int_to_ptr.vmem [resolvable:$true] %s420_s10 }
 0x160   : > { %s730_s20 = scalar_lea.vmem %s421_s10, 256  ;;  %p737_p10 = scmp.lt.s32.totalorder %s421_s10, %s421_s10 }
 0x161   : > { %p731_p8 = scmp.ne.s32.totalorder %s421_s10, %s730_s20  ;;  %p738_p0 = scmp.lt.s32.totalorder %s730_s20, %s730_s20 }
 0x163   : > { %p732_p2 = pnand %p731_p8, %p1025_p4  ;;  %p739_p5 = por %p738_p0, %p737_p10 }
 0x165   : > { %p733_p3 = pneg %p732_p2 }
 0x167   : > { %p740_p6 = pnand %p739_p5, %p733_p3 }
 0x169   : > { %743 = shalt.err (!%p740_p6)
}
 0x16a   : > { %s744_s18 = scalar_lea.hbm %s1072_s3, 256 }
 0x16b   : > { %p745_p11 = scmp.ne.s32.totalorder %s1072_s3, %s744_s18  ;;  %p750_p7 = scmp.lt.u32.totalorder %s744_s18, %s1072_s3 }
 0x16d   : > { %p746_p13 = pnand %p745_p11, %p1025_p4 }
 0x16f   : > { %p747_p1 = pneg %p746_p13 }
 0x171   : > { %p752_p9 = pnand %p750_p7, %p747_p1 }
 0x173   : > { %755 = shalt.err (!%p752_p9)
}
 0x174   : > { %s825_s21 = smov 128   ;;  %s826_s5 = smov 8  }
 0x175   : > { %591 = dma.vmem_to_hbm [thread:$0]  (%p1025_p4), %s421_s10, 256, %s1072_s3, [#allocation5], %s825_s21, %s825_s21, %s826_s5  }
 0x176   : > { %789 = dma.done.wait (%p1025_p4), [#allocation5], 256  }
 0x177   : > { %791 = vsyncadd (%p1025_p4), [#allocation5], 4294967040 }
 0x178 PF: > { %s20_s17 = sadd.s32 1, %s814_s17   ;;  %s1081_s12 = smov %s798_s13 }
 0x179   : > { %p17_p12 = scmp.ge.s32.totalorder %s20_s17, 4   ;;  %s1082_s13 = smov %s802_s14 }
 0x17a   : > { %s1083_s14 = smov %s898_s24  ;;  %s1084_s15 = smov %s810_s16 }
 0x17b   : > { %s1085_s16 = smov %s1087_s19  ;;  %19 = sbr.rel (!%p17_p12) target bundleno = 7 (0x7), region = 94 }
 0x182   :  { %436 = vsyncpa [#allocation4], 1 }
 0x183   :  { %438 = vsyncpa [#allocation4 + $0x1], 1 }
 0x184   :  { %439 = vsyncpa [#allocation7], 1 }
 0x185   :  { %441 = vsyncpa [#allocation7 + $0x1], 1 }
 0x186   :  { %442 = vsyncpa [#allocation5], 1 }
 0x187   :  { %444 = vsyncpa [#allocation5 + $0x1], 1 }

</bundles_post_ra>
